<compile_context>
chip_gen: v5e
topology: v5e:2x2
jax: 0.10.0
libtpu: 0.0.40
codegen_flags: <defaults>
</compile_context>

<pallas_src>
import jax
import jax.numpy as jnp
from jax import lax
from jax.experimental import pallas as pl
from jax.experimental.pallas import tpu as pltpu


def _round_up(v, m):
    return (v + m - 1) // m * m


def qgnn_kernel(w_ref, x_ref, b_ref, o_ref):
    # w: (Q, K) f32, resident.  x: (TILE_B, K) f32, natural layout.
    # b: (Q, 1) f32.            o: (Q, TILE_B) f32, lane-dense.
    w = w_ref[...]
    x = x_ref[...]
    # Contract both operands on their last dim: (Q,K) . (TILE_B,K)^T -> (Q,TILE_B).
    # Any in-VMEM relayout the MXU needs for the transposed RHS is hidden
    # under the x DMA (the kernel is HBM-bandwidth bound).
    z = lax.dot_general(w, x, (((1,), (1,)), ((), ())),
                        preferred_element_type=jnp.float32)
    z = z + b_ref[...]                     # broadcast (Q, 1) over lanes, f32
    q = jnp.tanh(z)                        # EUP transcendental, f32

    # AngleEmbedding RX + PauliZ expectation == cos(q).  |q| < 1 since
    # q = tanh(.), so a degree-8 even Taylor polynomial on the VPU is exact to
    # < 3e-7 there and avoids any dependence on a cos lowering.
    t2 = q * q
    cos_q = 1.0 + t2 * (-0.5 + t2 * (1.0 / 24.0
                                     + t2 * (-1.0 / 720.0
                                             + t2 * (1.0 / 40320.0))))
    o_ref[...] = cos_q.astype(o_ref.dtype)


def _vmem_limit_bytes(tile_b, n_qubits, in_dim):
    # Explicit buffer math (f32, native (8,128) VMEM tiling, double-buffered
    # pipeline) instead of a flat limit, so the same tiling stays safe on
    # v7x's 64 MiB physical VMEM as well as v5e/v6e's 128 MiB.
    f32 = 4
    x_buf = _round_up(tile_b, 8) * _round_up(in_dim, 128) * f32
    o_buf = _round_up(n_qubits, 8) * _round_up(tile_b, 128) * f32
    w_buf = _round_up(n_qubits, 8) * _round_up(in_dim, 128) * f32
    b_buf = _round_up(n_qubits, 8) * 128 * f32
    total = 2 * (x_buf + o_buf + w_buf + b_buf)        # double buffering
    total = int(total * 1.5) + (1 << 20)               # headroom / internal scratch
    return max(total, 32 * 1024 * 1024)


def qgnn_layer_pallas(x, w, b, *, max_tile_b=16384, transpose_output=True):
    """cos(tanh(x @ w.T + b)) via a Pallas TPU kernel.

    x: (B, in_dim) f32, w: (n_qubits, in_dim) f32, b: (n_qubits,) f32.
    Returns (B, n_qubits) f32 (module layout).  Consumers that can take the
    lane-major (n_qubits, B) layout should pass transpose_output=False to
    skip the final narrow HBM transpose (~10-20% of total traffic).
    """
    B, in_dim = x.shape
    n_qubits = w.shape[0]

    if B <= max_tile_b:
        # Single grid step: blocks equal the full array dims, so no (8,128)
        # divisibility constraint applies.
        tile_b = B
    else:
        # Even number (>= 2) of batch steps feeds both v7x TensorCores via the
        # "parallel" axis; the tile must be a multiple of 128 so the
        # lane-dense output block satisfies the (8,128) constraint.
        # Non-divisible B is handled by Pallas' boundary-block masking.
        n_steps = pl.cdiv(B, max_tile_b)
        n_steps += n_steps % 2
        tile_b = _round_up(pl.cdiv(B, n_steps), 128)
    grid = (pl.cdiv(B, tile_b),)

    x_f32 = x.astype(jnp.float32)
    w_f32 = w.astype(jnp.float32)
    b2 = b.reshape(n_qubits, 1).astype(jnp.float32)

    out_qb = pl.pallas_call(
        qgnn_kernel,
        out_shape=jax.ShapeDtypeStruct((n_qubits, B), jnp.float32),
        grid=grid,
        in_specs=[
            pl.BlockSpec((n_qubits, in_dim), lambda i: (0, 0)),   # W, resident
            pl.BlockSpec((tile_b, in_dim), lambda i: (i, 0)),     # x, natural layout
            pl.BlockSpec((n_qubits, 1), lambda i: (0, 0)),        # bias, resident
        ],
        out_specs=pl.BlockSpec((n_qubits, tile_b), lambda i: (0, i)),
        compiler_params=pltpu.CompilerParams(
            dimension_semantics=("parallel",),   # batch sharded across cores
            vmem_limit_bytes=_vmem_limit_bytes(tile_b, n_qubits, in_dim),
        ),
    )(w_f32, x_f32, b2)

    if transpose_output:
        # Module-parity (B, n_qubits) layout; narrow 4xB transpose, typically
        # fused into the consumer by XLA.
        return out_qb.T
    return out_qb


def qgnn_layer_xla(x, w, b):
    # For small batches (B <~ 2-4K) one tiny XLA fusion beats the pallas_call
    # fixed cost; the Pallas path only pays off once it is HBM-BW bound.
    return jnp.cos(jnp.tanh(x @ w.T + b[None, :]))


def qgnn_layer(x, w, b, *, min_pallas_batch=2048, **kwargs):
    if x.shape[0] < min_pallas_batch:
        return qgnn_layer_xla(x, w, b)
    return qgnn_layer_pallas(x, w, b, **kwargs)


def qgnn_ref_f32(x, w, b):
    # Pure-f32 module semantics (force a full-precision matmul on TPU).
    z = jnp.dot(x, w.T, precision=jax.lax.Precision.HIGHEST) + b[None, :]
    return jnp.cos(jnp.tanh(z))


if __name__ == "__main__":
    # Small shapes consistent with the module: in_dim=32, n_qubits=4, batch=8.
    B, in_dim, n_qubits = 8, 32, 4

    key = jax.random.PRNGKey(0)
    kx, kw, kb = jax.random.split(key, 3)

    x = jax.random.normal(kx, (B, in_dim), dtype=jnp.float32)
    bound = 1.0 / (in_dim ** 0.5)
    w = jax.random.uniform(kw, (n_qubits, in_dim), dtype=jnp.float32,
                           minval=-bound, maxval=bound)
    b = jax.random.uniform(kb, (n_qubits,), dtype=jnp.float32,
                           minval=-bound, maxval=bound)

    # --- small-shape run through the Pallas kernel (single grid step) ---
    out = jax.block_until_ready(qgnn_layer_pallas(x, w, b))
    assert out.shape == (B, n_qubits)
    # Observed error vs f32 reference is ~1e-6; loose gate kept for safety.
    assert jnp.allclose(out, qgnn_ref_f32(x, w, b), atol=5e-3, rtol=1e-3), \
        "small-batch mismatch vs f32 reference"

    # --- larger batch exercising the tiled path: 4 even grid steps of 384 ---
    B2 = 1536
    x2 = jax.random.normal(jax.random.PRNGKey(1), (B2, in_dim), dtype=jnp.float32)
    out2 = jax.block_until_ready(qgnn_layer_pallas(x2, w, b, max_tile_b=512))
    assert out2.shape == (B2, n_qubits)
    assert jnp.allclose(out2, qgnn_ref_f32(x2, w, b), atol=5e-3, rtol=1e-3), \
        "tiled-path mismatch vs f32 reference"

    # --- lane-major output path (skips the trailing narrow transpose) ---
    out3 = jax.block_until_ready(
        qgnn_layer_pallas(x2, w, b, max_tile_b=512, transpose_output=False))
    assert out3.shape == (n_qubits, B2)
    assert jnp.allclose(out3.T, out2, atol=1e-6, rtol=1e-6), \
        "lane-major output mismatch"

    print("KERNEL_OK")
</pallas_src>

<mosaic_0001>
module attributes {stable_mosaic.version = 11 : i64} {
  func.func @qgnn_kernel(%arg0: i32, %arg1: memref<4x32xf32, #tpu.memory_space<vmem>>, %arg2: memref<8x32xf32, #tpu.memory_space<vmem>>, %arg3: memref<4x1xf32, #tpu.memory_space<vmem>>, %arg4: memref<4x8xf32, #tpu.memory_space<vmem>>) attributes {dimension_semantics = [#tpu.dimension_semantics<parallel>], iteration_bounds = array<i64: 1>, scalar_prefetch = 0 : i64, scratch_operands = 0 : i64, tpu.core_type = #tpu.core_type<tc>, window_params = [{pipeline_mode = #tpu.pipeline_mode<synchronous>, transform_indices = @transform_0, window_bounds = array<i64: 4, 32>}, {transform_indices = @transform_1, window_bounds = array<i64: 8, 32>}, {pipeline_mode = #tpu.pipeline_mode<synchronous>, transform_indices = @transform_2, window_bounds = array<i64: 4, 1>}, {transform_indices = @transform_3, window_bounds = array<i64: 4, 8>}]} {
    %c0 = arith.constant 0 : index
    %c0_0 = arith.constant 0 : index
    %0 = vector.load %arg1[%c0, %c0_0] : memref<4x32xf32, #tpu.memory_space<vmem>>, vector<4x32xf32>
    %c0_1 = arith.constant 0 : index
    %c0_2 = arith.constant 0 : index
    %1 = vector.load %arg2[%c0_1, %c0_2] : memref<8x32xf32, #tpu.memory_space<vmem>>, vector<8x32xf32>
    %cst = arith.constant dense<0.000000e+00> : vector<4x8xf32>
    %2 = tpu.matmul %0, %1, %cst {dimension_numbers = #tpu.dot_dimension_numbers<[1], [1], [0], [0], [0, 0, 1, 0], [], []>} : vector<4x32xf32>, vector<8x32xf32>, vector<4x8xf32> -> vector<4x8xf32>
    %c0_3 = arith.constant 0 : index
    %c0_4 = arith.constant 0 : index
    %3 = vector.load %arg3[%c0_3, %c0_4] : memref<4x1xf32, #tpu.memory_space<vmem>>, vector<4x1xf32>
    %4 = vector.broadcast %3 : vector<4x1xf32> to vector<4x8xf32>
    %5 = arith.addf %2, %4 : vector<4x8xf32>
    %6 = math.tanh %5 : vector<4x8xf32>
    %7 = arith.mulf %6, %6 : vector<4x8xf32>
    %cst_5 = arith.constant 2.48015876E-5 : f32
    %8 = vector.broadcast %cst_5 : f32 to vector<4x8xf32>
    %9 = arith.mulf %7, %8 : vector<4x8xf32>
    %cst_6 = arith.constant -0.00138888892 : f32
    %10 = vector.broadcast %cst_6 : f32 to vector<4x8xf32>
    %11 = arith.addf %10, %9 : vector<4x8xf32>
    %12 = arith.mulf %7, %11 : vector<4x8xf32>
    %cst_7 = arith.constant 0.0416666679 : f32
    %13 = vector.broadcast %cst_7 : f32 to vector<4x8xf32>
    %14 = arith.addf %13, %12 : vector<4x8xf32>
    %15 = arith.mulf %7, %14 : vector<4x8xf32>
    %cst_8 = arith.constant -5.000000e-01 : f32
    %16 = vector.broadcast %cst_8 : f32 to vector<4x8xf32>
    %17 = arith.addf %16, %15 : vector<4x8xf32>
    %18 = arith.mulf %7, %17 : vector<4x8xf32>
    %cst_9 = arith.constant 1.000000e+00 : f32
    %19 = vector.broadcast %cst_9 : f32 to vector<4x8xf32>
    %20 = arith.addf %19, %18 : vector<4x8xf32>
    %c0_10 = arith.constant 0 : index
    %c0_11 = arith.constant 0 : index
    %21 = vector.load %arg4[%c0_10, %c0_11] : memref<4x8xf32, #tpu.memory_space<vmem>>, vector<4x8xf32>
    tpu.vector_store %arg4[%c0_10, %c0_11], %20 {strides = array<i32>} : memref<4x8xf32, #tpu.memory_space<vmem>>, vector<4x8xf32>,
    return
  }
  func.func @transform_0(%arg0: i32) -> (i32, i32) {
    %c0_i32 = arith.constant 0 : i32
    %c0_i32_0 = arith.constant 0 : i32
    %c0_i32_1 = arith.constant 0 : i32
    return %c0_i32, %c0_i32_0 : i32, i32
  }
  func.func @transform_1(%arg0: i32) -> (i32, i32) {
    %c0_i32 = arith.constant 0 : i32
    %c0_i32_0 = arith.constant 0 : i32
    return %arg0, %c0_i32 : i32, i32
  }
  func.func @transform_2(%arg0: i32) -> (i32, i32) {
    %c0_i32 = arith.constant 0 : i32
    %c0_i32_0 = arith.constant 0 : i32
    %c0_i32_1 = arith.constant 0 : i32
    return %c0_i32, %c0_i32_0 : i32, i32
  }
  func.func @transform_3(%arg0: i32) -> (i32, i32) {
    %c0_i32 = arith.constant 0 : i32
    %c0_i32_0 = arith.constant 0 : i32
    return %c0_i32, %arg0 : i32, i32
  }
}

</mosaic_0001>

<bundles_post_ra>
// kernel: tpu_custom_call.1
= control target key start
LH: loop header
LB: loop body
LE: loop exit
PB: predicated region body
PF: predicated region fallthrough
CT: control target
= control target key end

     0   :  { %8 = vsyncpa [#allocation3], 0  ;;  %s188_s0 = inlined_call_operand.vmem [shape: f32[4,32], index: 0, kind: input, shape index: {}]   ;;  %s189_s1 = inlined_call_operand.hbm [shape: f32[8,32], index: 1, kind: input, shape index: {}]   ;;  %s190_s2 = inlined_call_operand.vmem [shape: f32[4,1], index: 2, kind: input, shape index: {}]   ;;  %s191_s3 = inlined_call_operand.hbm [shape: f32[4,8], index: 3, kind: output, shape index: {}]  }
   0x1   :  { %9 = vsyncpa [#allocation4], 0  ;;  %s17_s14 = sshll.u32 %s189_s1, 4  ;;  %s153_s15 = smov [#allocation2]   ;;  %s18_s14 = int_to_ptr.hbm [resolvable:$true] %s17_s14 }
   0x2   :  { %s19_s16 = sshll.u32 %s153_s15, 4  ;;  %s20_s16 = int_to_ptr.vmem [resolvable:$true] %s19_s16 }
   0x3   :  { %22 = dma.hbm_to_vmem [thread:$0]  %s18_s14, 128, %s20_s16, [#allocation3]  }
   0x4   :  { %149 = dma.done.wait [#allocation3], 128  }
   0x5   :  { %150 = vsyncadd [#allocation3], 4294967168  ;;  %v154_v0 = vmov 0   ;;  %vm37_vm0 = vcmask 261120   ;;  %v30_v1 = vld [vmem:[#allocation2] sm:$0xff]  ;;  %s155_s1 = smov [#allocation5]  }
   0x6   :  { %98 = vset.pattern.permute.xlu0 %v154_v0  ;;  %v31_v2 = vld [vmem:[%s190_s2] sm:$0xf]  ;;  %93 = vmatpush.xpose.msk.msra.mxu0 %vm37_vm0, %v30_v1  ;;  %s81_s2 = sshll.u32 %s155_s1, 4  ;;  %vm74_vm1 = vcmask 60416   ;;  %s82_s2 = int_to_ptr.vmem [resolvable:$true] %s81_s2 }
   0x7   :  { %v29_v3 = vld [vmem:[%s188_s0] sm:$0xf]  ;;  %34 = vperm.xlu0 %98, %v31_v2   ;;  %s83_s0 = sshll.u32 %s191_s3, 4  ;;  %s84_s0 = int_to_ptr.hbm [resolvable:$true] %s83_s0 }
   0x9   :  { %94 = vmatmul.msk.f32.vlgmr.msra.gmra.mxu0 %vm37_vm0, %v29_v3 }
  0x79   :  { %v35_v4 = vpop.permute.xlu0 %34 }
  0x86   :  { %v61_v5 = vpop.f32.mrf.mxu0 }
  0x87   :  { %v62_v6 = vadd.f32 %v61_v5, %v35_v4 }
  0x89   :  { %99 = vtanh.f32 %v62_v6 }
  0x8f   :  { %v100_v7 = vpop.eup %99 }
  0x90   :  { %v65_v8 = vmul.f32 %v100_v7, %v100_v7 }
  0x92   :  { %v66_v9 = vmul.f32 2.4801588e-05, %v65_v8 }
  0x94   :  { %v67_v10 = vadd.f32 -0.0013888889, %v66_v9 }
  0x96   :  { %v68_v11 = vmul.f32 %v67_v10, %v65_v8 }
  0x98   :  { %v69_v12 = vadd.f32 0.041666668, %v68_v11 }
  0x9a   :  { %v70_v13 = vmul.f32 %v69_v12, %v65_v8 }
  0x9c   :  { %v71_v14 = vadd.f32 -0.5, %v70_v13 }
  0x9e   :  { %v72_v15 = vmul.f32 %v71_v14, %v65_v8 }
  0xa0   :  { %v73_v16 = vadd.f32 1.0, %v72_v15 }
  0xa2   :  { %75 = vst.msk [vmem:[#allocation5] sm:$0xf] %vm74_vm1, %v73_v16 }
  0xa3   :  { %86 = dma.vmem_to_hbm [thread:$0]  %s82_s2, 64, %s84_s0, [#allocation4]  }
  0xa4   :  { %151 = dma.done.wait [#allocation4], 64  }
  0xa5   :  { %152 = vsyncadd [#allocation4], 4294967232 }
  0xa6   :  { %91 = vsyncpa [#allocation3], 1 }
  0xa7   :  { %92 = vsyncpa [#allocation4], 1 }

</bundles_post_ra>
